<compile_context>
chip_gen: v7x
topology: tpu7x:2x2x1
jax: 0.10.0
libtpu: 0.0.40
codegen_flags: <defaults>
</compile_context>

<pallas_src>
import functools

import numpy as np
import jax
import jax.numpy as jnp
from jax.experimental import pallas as pl
from jax.experimental.pallas import tpu as pltpu

LEAKY_SLOPE = 0.01   # nn.LeakyReLU default
BN_EPS = 1e-5        # nn.BatchNorm default


def leaky_relu(x):
    return jnp.where(x > 0, x, LEAKY_SLOPE * x)


def _round_up(x, m):
    return ((x + m - 1) // m) * m


# ----------------------------------------------------------------------------
# get_edge_features — kNN + gather (plain JAX glue; argsort/gather are not a
# Pallas hot path).
# ----------------------------------------------------------------------------
def get_edge_features(x, k):
    """x: [B, dims, N] -> [B, 2*dims, N, k]   (mirrors the torch helper)."""
    B, dims, N = x.shape
    xt = jnp.swapaxes(x, 1, 2)                              # [B, N, dims]
    xi = -2.0 * jnp.einsum('bnd,bdm->bnm', xt, x)
    xs = jnp.sum(xt * xt, axis=2, keepdims=True)            # [B, N, 1]
    dist = xi + xs + jnp.swapaxes(xs, 1, 2)                 # [B, N, N]
    idx = jnp.argsort(dist, axis=2)[:, :, 1:k + 1]          # [B, N, k]
    gather = jax.vmap(lambda feat, ind: feat[:, ind])       # [C,N],[N,k]->[C,N,k]
    neighbors = gather(x, idx)
    central = jnp.broadcast_to(x[:, :, :, None], (B, dims, N, k))
    return jnp.concatenate([central, neighbors - central], axis=1)


# ----------------------------------------------------------------------------
# Main Pallas kernel: upsample_edgeConv (+ BN1d/LeakyReLU of upsample_cov).
#   ef_ref      : [Tm, k*C2]   lane layout col = j*C2 + c           (bf16)
#   wc_ef_ref   : [k*C2, O2p]  conv2 weight for the raw edge half   (bf16)
#   wc_inte_ref : [outw, 2*C2, O2p] conv2 weight for the inte half  (bf16)
#   whk_ref     : [kw*C2, 2*C2] inte_conv_hk weight (both halves)   (bf16)
#   bhk_ref     : [1, 2*C2]    inte_conv_hk bias (BN folded)        (f32)
#   bc_ref      : [1, O2p]     conv2 bias (BN folded)               (f32)
#   scale/shift : [1, O2p]     BN1d(Fout) affine, duplicated 2x     (f32)
# ----------------------------------------------------------------------------
def _edgeconv_kernel(kw, outw, C2,
                     ef_ref, wc_ef_ref, wc_inte_ref, whk_ref, bhk_ref,
                     bc_ref, scale_ref, shift_ref, out_ref):
    ef = ef_ref[...]                                       # [Tm, k*C2]

    # conv2 contribution of the raw edge features: one wide-K MXU matmul.
    acc = jnp.dot(ef, wc_ef_ref[...], preferred_element_type=jnp.float32)

    whk = whk_ref[...]
    bhk = bhk_ref[...]
    # inte_conv_hk + re-interleave + its conv2 contribution, one window per r.
    for r in range(outw):
        window = ef[:, r * C2:(r + kw) * C2]               # [Tm, kw*C2]
        pair = jnp.dot(window, whk, preferred_element_type=jnp.float32)
        pair = leaky_relu(pair + bhk)                      # [Tm, 2*C2]
        acc = acc + jnp.dot(pair.astype(whk.dtype), wc_inte_ref[r],
                            preferred_element_type=jnp.float32)

    y = jnp.maximum(acc + bc_ref[...], 0.0)                # conv2dbr ReLU
    y = y * scale_ref[...] + shift_ref[...]                # BN1d (eval, dup x2)
    out_ref[...] = leaky_relu(y)


# ----------------------------------------------------------------------------
# Tiny per-batch MLP (maxpool -> fc -> g_fc), single-block Pallas kernel.
# ----------------------------------------------------------------------------
def _fc_kernel(xs_ref, w1_ref, b1_ref, w2_ref, b2_ref, wg_ref, bg_ref,
               xs_out_ref, g_out_ref):
    h = leaky_relu(jnp.dot(xs_ref[...], w1_ref[...],
                           preferred_element_type=jnp.float32) + b1_ref[...])
    xs = leaky_relu(jnp.dot(h, w2_ref[...],
                            preferred_element_type=jnp.float32) + b2_ref[...])
    g = leaky_relu(jnp.dot(xs, wg_ref[...],
                           preferred_element_type=jnp.float32) + bg_ref[...])
    xs_out_ref[...] = xs
    g_out_ref[...] = g


def _full_spec(a):
    nd = a.ndim
    return pl.BlockSpec(a.shape, lambda i, _n=nd: (0,) * _n)


# ----------------------------------------------------------------------------
# Wrapper: layout plumbing + pallas_calls.
# ----------------------------------------------------------------------------
def bilateral_block_l1_forward(x, params, *, k, Fout, maxpool,
                               tile_m=1024, compute_dtype=jnp.bfloat16):
    B, Fin, N = x.shape
    assert maxpool == N, "module's fc path requires the maxpool window == N"
    C2 = 2 * Fin
    O2 = 2 * Fout
    kw = k // 2 + 1
    outw = k - kw + 1                       # == k // 2 (module requires even k)
    assert 2 * outw == k, "module's reshape sequence requires even k"
    M = B * N
    O2p = _round_up(O2, 128)                # lane-dense output store

    # ---- edge features, lane-packed as [M, k*C2] ---------------------------
    ef = get_edge_features(x, k)                            # [B, C2, N, k]
    ef_wide = jnp.transpose(ef, (0, 2, 3, 1)).reshape(M, k * C2)

    # ---- tile sizing: big tiles, clamped by a VMEM budget -------------------
    tile = min(int(tile_m), _round_up(M, 8))
    if M >= 16:
        # keep >= 2 grid steps so dual-TC chips (v7x) can split the parallel axis
        tile = min(tile, _round_up((M + 1) // 2, 8))
    tile = max(8, (tile // 8) * 8)
    in_bytes = jnp.dtype(compute_dtype).itemsize

    def _tile_bytes(t):  # double-buffered input + double-buffered f32 output
        return 2 * t * k * C2 * in_bytes + 2 * t * O2p * 4

    while tile > 8 and _tile_bytes(tile) > (24 << 20):
        tile = max(8, ((tile // 2) // 8) * 8)
    Mp = _round_up(M, tile)
    if Mp != M:
        ef_wide = jnp.pad(ef_wide, ((0, Mp - M), (0, 0)))
    ef_wide = ef_wide.astype(compute_dtype)

    # ---- weight re-layout (BN already folded, eval mode) --------------------
    Wc, bc = params['Wc'], params['bc']                     # [O2, C2, 2k], [O2]
    wc_ef = jnp.transpose(Wc[:, :, :k], (2, 1, 0)).reshape(k * C2, O2)
    wc_inte = jnp.transpose(Wc[:, :, k:].reshape(O2, C2, 2, outw),
                            (3, 2, 1, 0)).reshape(outw, 2 * C2, O2)
    wc_ef = jnp.pad(wc_ef, ((0, 0), (0, O2p - O2))).astype(compute_dtype)
    wc_inte = jnp.pad(wc_inte, ((0, 0), (0, 0), (0, O2p - O2))).astype(compute_dtype)
    bc_p = jnp.pad(bc, (0, O2p - O2)).reshape(1, O2p)

    Whk, bhk = params['Whk'], params['bhk']                 # [2*C2, C2, kw], [2*C2]
    whk_both = jnp.transpose(Whk.reshape(C2, 2, C2, kw),
                             (3, 2, 1, 0)).reshape(kw * C2, 2 * C2)
    whk_both = whk_both.astype(compute_dtype)
    bhk_both = bhk.reshape(C2, 2).T.reshape(1, 2 * C2)

    scale = jnp.repeat(params['bn1_scale'], 2)              # BN1d(Fout), dup per pair
    shift = jnp.repeat(params['bn1_shift'], 2)
    scale_p = jnp.pad(scale, (0, O2p - O2), constant_values=1.0).reshape(1, O2p)
    shift_p = jnp.pad(shift, (0, O2p - O2)).reshape(1, O2p)

    grid = (Mp // tile,)
    kern = functools.partial(_edgeconv_kernel, kw, outw, C2)
    y_flat = pl.pallas_call(
        kern,
        out_shape=jax.ShapeDtypeStruct((Mp, O2p), jnp.float32),
        grid_spec=pltpu.PrefetchScalarGridSpec(
            num_scalar_prefetch=0,
            grid=grid,
            in_specs=[
                pl.BlockSpec((tile, k * C2), lambda i: (i, 0)),
                _full_spec(wc_ef), _full_spec(wc_inte), _full_spec(whk_both),
                _full_spec(bhk_both), _full_spec(bc_p),
                _full_spec(scale_p), _full_spec(shift_p),
            ],
            out_specs=pl.BlockSpec((tile, O2p), lambda i: (i, 0)),
        ),
        compiler_params=pltpu.CompilerParams(
            dimension_semantics=("parallel",),
            vmem_limit_bytes=48 * 1024 * 1024),
    )(ef_wide, wc_ef, wc_inte, whk_both, bhk_both, bc_p, scale_p, shift_p)

    # undo layout: [M, O2] with col = 2f+s  ->  [B, Fout, 2N] (pos = s*N + n)
    y = y_flat[:M, :O2].reshape(B, N, Fout, 2)
    y = jnp.transpose(y, (0, 2, 3, 1)).reshape(B, Fout, 2 * N)   # x_ec

    # ---- maxpool -> fc -> g_fc (tiny, single-block Pallas kernel) -----------
    xs_pool = jnp.max(x, axis=2)                            # MaxPool2d((1, N))
    Bp = _round_up(B, 8)
    xs_pad = jnp.pad(xs_pool, ((0, Bp - B), (0, 0)))
    w1 = params['Wfc1'].T
    b1 = params['bfc1'].reshape(1, -1)
    w2 = params['Wfc2'].T
    b2 = params['bfc2'].reshape(1, -1)
    wg = params['Wg'].T
    bg = params['bg'].reshape(1, -1)
    xs_o, g_o = pl.pallas_call(
        _fc_kernel,
        out_shape=(jax.ShapeDtypeStruct((Bp, Fout), jnp.float32),
                   jax.ShapeDtypeStruct((Bp, 512), jnp.float32)),
    )(xs_pad, w1, b1, w2, b2, wg, bg)
    xs_o = xs_o[:B]
    g_o = g_o[:B]

    # ---- repeat + concat (pure layout, left to XLA) -------------------------
    xs_rep = jnp.broadcast_to(xs_o[:, :, None], (B, Fout, 2 * N))
    g_rep = jnp.broadcast_to(g_o[:, :, None], (B, 512, 2 * N))
    x_out = jnp.concatenate([xs_rep, y], axis=1)            # [B, 2*Fout, 2N]
    g_out = jnp.concatenate([g_rep, y], axis=1)             # [B, 512+Fout, 2N]
    return x_out, g_out


# ----------------------------------------------------------------------------
# Deterministic synthetic parameters + eval-mode BN folding.
# ----------------------------------------------------------------------------
def init_params(key, Fin, Fout, k):
    C2, C4, O2 = 2 * Fin, 4 * Fin, 2 * Fout
    kw = k // 2 + 1
    it = iter(jax.random.split(key, 64))

    def nrm(shape, scale=0.1):
        return scale * jax.random.normal(next(it), shape, jnp.float32)

    def bn(n):
        gamma = 1.0 + 0.1 * jax.random.normal(next(it), (n,), jnp.float32)
        beta = 0.1 * jax.random.normal(next(it), (n,), jnp.float32)
        mean = 0.1 * jax.random.normal(next(it), (n,), jnp.float32)
        var = 0.5 + jax.random.uniform(next(it), (n,), jnp.float32)
        return gamma, beta, mean, var

    def fold(W, b, bnp):
        gamma, beta, mean, var = bnp
        s = gamma / jnp.sqrt(var + BN_EPS)
        shape = (s.shape[0],) + (1,) * (W.ndim - 1)
        return W * s.reshape(shape), (b - mean) * s + beta

    def affine(bnp):
        gamma, beta, mean, var = bnp
        s = gamma / jnp.sqrt(var + BN_EPS)
        return s, beta - mean * s

    p = {}
    p['Whk'], p['bhk'] = fold(nrm((C4, C2, kw)), nrm((C4,)), bn(C4))   # inte_conv_hk + BN2d
    p['Wc'], p['bc'] = fold(nrm((O2, C2, 2 * k)), nrm((O2,)), bn(O2))  # conv2 + BN2d
    p['bn1_scale'], p['bn1_shift'] = affine(bn(Fout))                  # BN1d after edgeConv
    p['Wfc1'], p['bfc1'] = fold(nrm((Fin, Fin)), nrm((Fin,)), bn(Fin))  # fc[0] + BN1d
    p['Wfc2'], p['bfc2'] = fold(nrm((Fout, Fin)), nrm((Fout,)), bn(Fout))  # fc[3] + BN1d
    p['Wg'], p['bg'] = fold(nrm((512, Fout)), nrm((512,)), bn(512))    # g_fc + BN1d
    return p


# ----------------------------------------------------------------------------
# Pure-JAX reference mirroring the torch forward (eval-mode BN, folded params).
# ----------------------------------------------------------------------------
def reference_forward(x, p, *, k, Fout):
    B, Fin, N = x.shape
    ef = get_edge_features(x, k)                            # [B, 2Fin, N, k]
    kw = k // 2 + 1
    outw = k - kw + 1
    C2 = 2 * Fin

    inte = jnp.stack(
        [jnp.einsum('bcnt,oct->bon', ef[:, :, :, r:r + kw], p['Whk'])
         for r in range(outw)], axis=-1)
    inte = leaky_relu(inte + p['bhk'][None, :, None, None])  # [B, 4Fin, N, outw]
    inte = jnp.transpose(inte, (0, 2, 1, 3))
    inte = inte.reshape(B, N, C2, 2, outw).reshape(B, N, C2, 2 * outw)
    inte = jnp.transpose(inte, (0, 2, 1, 3))                 # [B, 2Fin, N, k]

    merge = jnp.concatenate([ef, inte], axis=3)              # [B, 2Fin, N, 2k]
    y = jnp.einsum('bcnj,ocj->bon', merge, p['Wc']) + p['bc'][None, :, None]
    y = jnp.maximum(y, 0.0)                                  # [B, 2Fout, N]
    y = y.reshape(B, Fout, 2, N).reshape(B, Fout, 2 * N)
    y = leaky_relu(y * p['bn1_scale'][None, :, None] + p['bn1_shift'][None, :, None])

    xs = jnp.max(x, axis=2)                                  # MaxPool2d((1, N))
    xs = leaky_relu(xs @ p['Wfc1'].T + p['bfc1'])
    xs = leaky_relu(xs @ p['Wfc2'].T + p['bfc2'])
    g = leaky_relu(xs @ p['Wg'].T + p['bg'])

    xs_rep = jnp.broadcast_to(xs[:, :, None], (B, Fout, 2 * N))
    g_rep = jnp.broadcast_to(g[:, :, None], (B, 512, 2 * N))
    return (jnp.concatenate([xs_rep, y], axis=1),
            jnp.concatenate([g_rep, y], axis=1))


if __name__ == "__main__":
    B, Fin, Fout, N, num_k = 2, 4, 8, 16, 20
    maxpool = N                     # module requires pooled width == 1
    k = num_k // 2                  # upsample_edgeConv uses num_k // 2
    key = jax.random.PRNGKey(0)
    kx, kp = jax.random.split(key)
    x = jax.random.normal(kx, (B, Fin, N), jnp.float32)
    params = init_params(kp, Fin, Fout, k)

    x_out, g_out = bilateral_block_l1_forward(
        x, params, k=k, Fout=Fout, maxpool=maxpool, tile_m=1024)
    x_out, g_out = jax.block_until_ready((x_out, g_out))
    assert x_out.shape == (B, 2 * Fout, 2 * N)
    assert g_out.shape == (B, 512 + Fout, 2 * N)

    x_ref, g_ref = reference_forward(x, params, k=k, Fout=Fout)
    # bf16 matmul inputs with f32 accumulation -> bf16-level tolerance.
    np.testing.assert_allclose(np.asarray(x_out), np.asarray(x_ref),
                               rtol=5e-2, atol=5e-2)
    np.testing.assert_allclose(np.asarray(g_out), np.asarray(g_ref),
                               rtol=5e-2, atol=5e-2)
    print("KERNEL_OK")
</pallas_src>

<mosaic_0001>
module attributes {stable_mosaic.version = 11 : i64} {
  func.func @_edgeconv_kernel(%arg0: i32, %arg1: memref<16x80xbf16, #tpu.memory_space<vmem>>, %arg2: memref<80x128xbf16, #tpu.memory_space<vmem>>, %arg3: memref<5x16x128xbf16, #tpu.memory_space<vmem>>, %arg4: memref<48x16xbf16, #tpu.memory_space<vmem>>, %arg5: memref<1x16xf32, #tpu.memory_space<vmem>>, %arg6: memref<1x128xf32, #tpu.memory_space<vmem>>, %arg7: memref<1x128xf32, #tpu.memory_space<vmem>>, %arg8: memref<1x128xf32, #tpu.memory_space<vmem>>, %arg9: memref<16x128xf32, #tpu.memory_space<vmem>>) attributes {dimension_semantics = [#tpu.dimension_semantics<parallel>], iteration_bounds = array<i64: 2>, scalar_prefetch = 0 : i64, scratch_operands = 0 : i64, tpu.core_type = #tpu.core_type<tc>, window_params = [{transform_indices = @transform_0, window_bounds = array<i64: 16, 80>}, {pipeline_mode = #tpu.pipeline_mode<synchronous>, transform_indices = @transform_1, window_bounds = array<i64: 80, 128>}, {pipeline_mode = #tpu.pipeline_mode<synchronous>, transform_indices = @transform_2, window_bounds = array<i64: 5, 16, 128>}, {pipeline_mode = #tpu.pipeline_mode<synchronous>, transform_indices = @transform_3, window_bounds = array<i64: 48, 16>}, {pipeline_mode = #tpu.pipeline_mode<synchronous>, transform_indices = @transform_4, window_bounds = array<i64: 1, 16>}, {pipeline_mode = #tpu.pipeline_mode<synchronous>, transform_indices = @transform_5, window_bounds = array<i64: 1, 128>}, {pipeline_mode = #tpu.pipeline_mode<synchronous>, transform_indices = @transform_6, window_bounds = array<i64: 1, 128>}, {pipeline_mode = #tpu.pipeline_mode<synchronous>, transform_indices = @transform_7, window_bounds = array<i64: 1, 128>}, {transform_indices = @transform_8, window_bounds = array<i64: 16, 128>}]} {
    %c0 = arith.constant 0 : index
    %c0_0 = arith.constant 0 : index
    %0 = vector.load %arg1[%c0, %c0_0] : memref<16x80xbf16, #tpu.memory_space<vmem>>, vector<16x80xbf16>
    %c0_1 = arith.constant 0 : index
    %c0_2 = arith.constant 0 : index
    %1 = vector.load %arg2[%c0_1, %c0_2] : memref<80x128xbf16, #tpu.memory_space<vmem>>, vector<80x128xbf16>
    %cst = arith.constant dense<0.000000e+00> : vector<16x128xf32>
    %2 = tpu.matmul %0, %1, %cst {dimension_numbers = #tpu.dot_dimension_numbers<[1], [0], [0], [1], [0, 0, 1, 1], [], []>} : vector<16x80xbf16>, vector<80x128xbf16>, vector<16x128xf32> -> vector<16x128xf32>
    %c0_3 = arith.constant 0 : index
    %c0_4 = arith.constant 0 : index
    %3 = vector.load %arg4[%c0_3, %c0_4] : memref<48x16xbf16, #tpu.memory_space<vmem>>, vector<48x16xbf16>
    %c0_5 = arith.constant 0 : index
    %c0_6 = arith.constant 0 : index
    %4 = vector.load %arg5[%c0_5, %c0_6] : memref<1x16xf32, #tpu.memory_space<vmem>>, vector<1x16xf32>
    %5 = vector.extract_strided_slice %0 {offsets = [0, 0], sizes = [16, 48], strides = [1, 1]} : vector<16x80xbf16> to vector<16x48xbf16>
    %cst_7 = arith.constant dense<0.000000e+00> : vector<16x16xf32>
    %6 = tpu.matmul %5, %3, %cst_7 {dimension_numbers = #tpu.dot_dimension_numbers<[1], [0], [0], [1], [0, 0, 1, 1], [], []>} : vector<16x48xbf16>, vector<48x16xbf16>, vector<16x16xf32> -> vector<16x16xf32>
    %7 = vector.broadcast %4 : vector<1x16xf32> to vector<16x16xf32>
    %8 = arith.addf %6, %7 : vector<16x16xf32>
    %cst_8 = arith.constant 0.000000e+00 : f32
    %9 = vector.broadcast %cst_8 : f32 to vector<16x16xf32>
    %10 = arith.cmpf ogt, %8, %9 : vector<16x16xf32>
    %cst_9 = arith.constant 0.00999999977 : f32
    %11 = vector.broadcast %cst_9 : f32 to vector<16x16xf32>
    %12 = arith.mulf %11, %8 : vector<16x16xf32>
    %13 = arith.select %10, %8, %12 : vector<16x16xi1>, vector<16x16xf32>
    %14 = arith.truncf %13 : vector<16x16xf32> to vector<16x16xbf16>
    %c0_10 = arith.constant 0 : index
    %c0_11 = arith.constant 0 : index
    %c0_12 = arith.constant 0 : index
    %15 = vector.load %arg3[%c0_10, %c0_11, %c0_12] : memref<5x16x128xbf16, #tpu.memory_space<vmem>>, vector<1x16x128xbf16>
    %16 = vector.shape_cast %15 : vector<1x16x128xbf16> to vector<16x128xbf16>
    %cst_13 = arith.constant dense<0.000000e+00> : vector<16x128xf32>
    %17 = tpu.matmul %14, %16, %cst_13 {dimension_numbers = #tpu.dot_dimension_numbers<[1], [0], [0], [1], [0, 0, 1, 1], [], []>} : vector<16x16xbf16>, vector<16x128xbf16>, vector<16x128xf32> -> vector<16x128xf32>
    %18 = arith.addf %2, %17 : vector<16x128xf32>
    %19 = vector.extract_strided_slice %0 {offsets = [0, 8], sizes = [16, 48], strides = [1, 1]} : vector<16x80xbf16> to vector<16x48xbf16>
    %cst_14 = arith.constant dense<0.000000e+00> : vector<16x16xf32>
    %20 = tpu.matmul %19, %3, %cst_14 {dimension_numbers = #tpu.dot_dimension_numbers<[1], [0], [0], [1], [0, 0, 1, 1], [], []>} : vector<16x48xbf16>, vector<48x16xbf16>, vector<16x16xf32> -> vector<16x16xf32>
    %21 = vector.broadcast %4 : vector<1x16xf32> to vector<16x16xf32>
    %22 = arith.addf %20, %21 : vector<16x16xf32>
    %cst_15 = arith.constant 0.000000e+00 : f32
    %23 = vector.broadcast %cst_15 : f32 to vector<16x16xf32>
    %24 = arith.cmpf ogt, %22, %23 : vector<16x16xf32>
    %cst_16 = arith.constant 0.00999999977 : f32
    %25 = vector.broadcast %cst_16 : f32 to vector<16x16xf32>
    %26 = arith.mulf %25, %22 : vector<16x16xf32>
    %27 = arith.select %24, %22, %26 : vector<16x16xi1>, vector<16x16xf32>
    %28 = arith.truncf %27 : vector<16x16xf32> to vector<16x16xbf16>
    %c1 = arith.constant 1 : index
    %c0_17 = arith.constant 0 : index
    %c0_18 = arith.constant 0 : index
    %29 = vector.load %arg3[%c1, %c0_17, %c0_18] : memref<5x16x128xbf16, #tpu.memory_space<vmem>>, vector<1x16x128xbf16>
    %30 = vector.shape_cast %29 : vector<1x16x128xbf16> to vector<16x128xbf16>
    %cst_19 = arith.constant dense<0.000000e+00> : vector<16x128xf32>
    %31 = tpu.matmul %28, %30, %cst_19 {dimension_numbers = #tpu.dot_dimension_numbers<[1], [0], [0], [1], [0, 0, 1, 1], [], []>} : vector<16x16xbf16>, vector<16x128xbf16>, vector<16x128xf32> -> vector<16x128xf32>
    %32 = arith.addf %18, %31 : vector<16x128xf32>
    %33 = vector.extract_strided_slice %0 {offsets = [0, 16], sizes = [16, 48], strides = [1, 1]} : vector<16x80xbf16> to vector<16x48xbf16>
    %cst_20 = arith.constant dense<0.000000e+00> : vector<16x16xf32>
    %34 = tpu.matmul %33, %3, %cst_20 {dimension_numbers = #tpu.dot_dimension_numbers<[1], [0], [0], [1], [0, 0, 1, 1], [], []>} : vector<16x48xbf16>, vector<48x16xbf16>, vector<16x16xf32> -> vector<16x16xf32>
    %35 = vector.broadcast %4 : vector<1x16xf32> to vector<16x16xf32>
    %36 = arith.addf %34, %35 : vector<16x16xf32>
    %cst_21 = arith.constant 0.000000e+00 : f32
    %37 = vector.broadcast %cst_21 : f32 to vector<16x16xf32>
    %38 = arith.cmpf ogt, %36, %37 : vector<16x16xf32>
    %cst_22 = arith.constant 0.00999999977 : f32
    %39 = vector.broadcast %cst_22 : f32 to vector<16x16xf32>
    %40 = arith.mulf %39, %36 : vector<16x16xf32>
    %41 = arith.select %38, %36, %40 : vector<16x16xi1>, vector<16x16xf32>
    %42 = arith.truncf %41 : vector<16x16xf32> to vector<16x16xbf16>
    %c2 = arith.constant 2 : index
    %c0_23 = arith.constant 0 : index
    %c0_24 = arith.constant 0 : index
    %43 = vector.load %arg3[%c2, %c0_23, %c0_24] : memref<5x16x128xbf16, #tpu.memory_space<vmem>>, vector<1x16x128xbf16>
    %44 = vector.shape_cast %43 : vector<1x16x128xbf16> to vector<16x128xbf16>
    %cst_25 = arith.constant dense<0.000000e+00> : vector<16x128xf32>
    %45 = tpu.matmul %42, %44, %cst_25 {dimension_numbers = #tpu.dot_dimension_numbers<[1], [0], [0], [1], [0, 0, 1, 1], [], []>} : vector<16x16xbf16>, vector<16x128xbf16>, vector<16x128xf32> -> vector<16x128xf32>
    %46 = arith.addf %32, %45 : vector<16x128xf32>
    %47 = vector.extract_strided_slice %0 {offsets = [0, 24], sizes = [16, 48], strides = [1, 1]} : vector<16x80xbf16> to vector<16x48xbf16>
    %cst_26 = arith.constant dense<0.000000e+00> : vector<16x16xf32>
    %48 = tpu.matmul %47, %3, %cst_26 {dimension_numbers = #tpu.dot_dimension_numbers<[1], [0], [0], [1], [0, 0, 1, 1], [], []>} : vector<16x48xbf16>, vector<48x16xbf16>, vector<16x16xf32> -> vector<16x16xf32>
    %49 = vector.broadcast %4 : vector<1x16xf32> to vector<16x16xf32>
    %50 = arith.addf %48, %49 : vector<16x16xf32>
    %cst_27 = arith.constant 0.000000e+00 : f32
    %51 = vector.broadcast %cst_27 : f32 to vector<16x16xf32>
    %52 = arith.cmpf ogt, %50, %51 : vector<16x16xf32>
    %cst_28 = arith.constant 0.00999999977 : f32
    %53 = vector.broadcast %cst_28 : f32 to vector<16x16xf32>
    %54 = arith.mulf %53, %50 : vector<16x16xf32>
    %55 = arith.select %52, %50, %54 : vector<16x16xi1>, vector<16x16xf32>
    %56 = arith.truncf %55 : vector<16x16xf32> to vector<16x16xbf16>
    %c3 = arith.constant 3 : index
    %c0_29 = arith.constant 0 : index
    %c0_30 = arith.constant 0 : index
    %57 = vector.load %arg3[%c3, %c0_29, %c0_30] : memref<5x16x128xbf16, #tpu.memory_space<vmem>>, vector<1x16x128xbf16>
    %58 = vector.shape_cast %57 : vector<1x16x128xbf16> to vector<16x128xbf16>
    %cst_31 = arith.constant dense<0.000000e+00> : vector<16x128xf32>
    %59 = tpu.matmul %56, %58, %cst_31 {dimension_numbers = #tpu.dot_dimension_numbers<[1], [0], [0], [1], [0, 0, 1, 1], [], []>} : vector<16x16xbf16>, vector<16x128xbf16>, vector<16x128xf32> -> vector<16x128xf32>
    %60 = arith.addf %46, %59 : vector<16x128xf32>
    %61 = vector.extract_strided_slice %0 {offsets = [0, 32], sizes = [16, 48], strides = [1, 1]} : vector<16x80xbf16> to vector<16x48xbf16>
    %cst_32 = arith.constant dense<0.000000e+00> : vector<16x16xf32>
    %62 = tpu.matmul %61, %3, %cst_32 {dimension_numbers = #tpu.dot_dimension_numbers<[1], [0], [0], [1], [0, 0, 1, 1], [], []>} : vector<16x48xbf16>, vector<48x16xbf16>, vector<16x16xf32> -> vector<16x16xf32>
    %63 = vector.broadcast %4 : vector<1x16xf32> to vector<16x16xf32>
    %64 = arith.addf %62, %63 : vector<16x16xf32>
    %cst_33 = arith.constant 0.000000e+00 : f32
    %65 = vector.broadcast %cst_33 : f32 to vector<16x16xf32>
    %66 = arith.cmpf ogt, %64, %65 : vector<16x16xf32>
    %cst_34 = arith.constant 0.00999999977 : f32
    %67 = vector.broadcast %cst_34 : f32 to vector<16x16xf32>
    %68 = arith.mulf %67, %64 : vector<16x16xf32>
    %69 = arith.select %66, %64, %68 : vector<16x16xi1>, vector<16x16xf32>
    %70 = arith.truncf %69 : vector<16x16xf32> to vector<16x16xbf16>
    %c4 = arith.constant 4 : index
    %c0_35 = arith.constant 0 : index
    %c0_36 = arith.constant 0 : index
    %71 = vector.load %arg3[%c4, %c0_35, %c0_36] : memref<5x16x128xbf16, #tpu.memory_space<vmem>>, vector<1x16x128xbf16>
    %72 = vector.shape_cast %71 : vector<1x16x128xbf16> to vector<16x128xbf16>
    %cst_37 = arith.constant dense<0.000000e+00> : vector<16x128xf32>
    %73 = tpu.matmul %70, %72, %cst_37 {dimension_numbers = #tpu.dot_dimension_numbers<[1], [0], [0], [1], [0, 0, 1, 1], [], []>} : vector<16x16xbf16>, vector<16x128xbf16>, vector<16x128xf32> -> vector<16x128xf32>
    %74 = arith.addf %60, %73 : vector<16x128xf32>
    %c0_38 = arith.constant 0 : index
    %c0_39 = arith.constant 0 : index
    %75 = vector.load %arg6[%c0_38, %c0_39] : memref<1x128xf32, #tpu.memory_space<vmem>>, vector<1x128xf32>
    %76 = vector.broadcast %75 : vector<1x128xf32> to vector<16x128xf32>
    %77 = arith.addf %74, %76 : vector<16x128xf32>
    %cst_40 = arith.constant 0.000000e+00 : f32
    %78 = vector.broadcast %cst_40 : f32 to vector<16x128xf32>
    %79 = arith.maximumf %77, %78 : vector<16x128xf32>
    %c0_41 = arith.constant 0 : index
    %c0_42 = arith.constant 0 : index
    %80 = vector.load %arg7[%c0_41, %c0_42] : memref<1x128xf32, #tpu.memory_space<vmem>>, vector<1x128xf32>
    %81 = vector.broadcast %80 : vector<1x128xf32> to vector<16x128xf32>
    %82 = arith.mulf %79, %81 : vector<16x128xf32>
    %c0_43 = arith.constant 0 : index
    %c0_44 = arith.constant 0 : index
    %83 = vector.load %arg8[%c0_43, %c0_44] : memref<1x128xf32, #tpu.memory_space<vmem>>, vector<1x128xf32>
    %84 = vector.broadcast %83 : vector<1x128xf32> to vector<16x128xf32>
    %85 = arith.addf %82, %84 : vector<16x128xf32>
    %cst_45 = arith.constant 0.000000e+00 : f32
    %86 = vector.broadcast %cst_45 : f32 to vector<16x128xf32>
    %87 = arith.cmpf ogt, %85, %86 : vector<16x128xf32>
    %cst_46 = arith.constant 0.00999999977 : f32
    %88 = vector.broadcast %cst_46 : f32 to vector<16x128xf32>
    %89 = arith.mulf %88, %85 : vector<16x128xf32>
    %90 = arith.select %87, %85, %89 : vector<16x128xi1>, vector<16x128xf32>
    %c0_47 = arith.constant 0 : index
    %c0_48 = arith.constant 0 : index
    %91 = vector.load %arg9[%c0_47, %c0_48] : memref<16x128xf32, #tpu.memory_space<vmem>>, vector<16x128xf32>
    tpu.vector_store %arg9[%c0_47, %c0_48], %90 {strides = array<i32>} : memref<16x128xf32, #tpu.memory_space<vmem>>, vector<16x128xf32>,
    return
  }
  func.func @transform_0(%arg0: i32) -> (i32, i32) {
    %c0_i32 = arith.constant 0 : i32
    %c0_i32_0 = arith.constant 0 : i32
    return %arg0, %c0_i32 : i32, i32
  }
  func.func @transform_1(%arg0: i32) -> (i32, i32) {
    %c0_i32 = arith.constant 0 : i32
    %c0_i32_0 = arith.constant 0 : i32
    %c0_i32_1 = arith.constant 0 : i32
    return %c0_i32, %c0_i32_0 : i32, i32
  }
  func.func @transform_2(%arg0: i32) -> (i32, i32, i32) {
    %c0_i32 = arith.constant 0 : i32
    %c0_i32_0 = arith.constant 0 : i32
    %c0_i32_1 = arith.constant 0 : i32
    %c0_i32_2 = arith.constant 0 : i32
    return %c0_i32, %c0_i32_0, %c0_i32_1 : i32, i32, i32
  }
  func.func @transform_3(%arg0: i32) -> (i32, i32) {
    %c0_i32 = arith.constant 0 : i32
    %c0_i32_0 = arith.constant 0 : i32
    %c0_i32_1 = arith.constant 0 : i32
    return %c0_i32, %c0_i32_0 : i32, i32
  }
  func.func @transform_4(%arg0: i32) -> (i32, i32) {
    %c0_i32 = arith.constant 0 : i32
    %c0_i32_0 = arith.constant 0 : i32
    %c0_i32_1 = arith.constant 0 : i32
    return %c0_i32, %c0_i32_0 : i32, i32
  }
  func.func @transform_5(%arg0: i32) -> (i32, i32) {
    %c0_i32 = arith.constant 0 : i32
    %c0_i32_0 = arith.constant 0 : i32
    %c0_i32_1 = arith.constant 0 : i32
    return %c0_i32, %c0_i32_0 : i32, i32
  }
  func.func @transform_6(%arg0: i32) -> (i32, i32) {
    %c0_i32 = arith.constant 0 : i32
    %c0_i32_0 = arith.constant 0 : i32
    %c0_i32_1 = arith.constant 0 : i32
    return %c0_i32, %c0_i32_0 : i32, i32
  }
  func.func @transform_7(%arg0: i32) -> (i32, i32) {
    %c0_i32 = arith.constant 0 : i32
    %c0_i32_0 = arith.constant 0 : i32
    %c0_i32_1 = arith.constant 0 : i32
    return %c0_i32, %c0_i32_0 : i32, i32
  }
  func.func @transform_8(%arg0: i32) -> (i32, i32) {
    %c0_i32 = arith.constant 0 : i32
    %c0_i32_0 = arith.constant 0 : i32
    return %arg0, %c0_i32 : i32, i32
  }
}

</mosaic_0001>

<bundles_post_ra>
// kernel: tpu_custom_call.1
= control target key start
LH: loop header
LB: loop body
LE: loop exit
PB: predicated region body
PF: predicated region fallthrough
CT: control target
= control target key end

     0   :  { %13 = vsyncpa [#allocation3], 0  ;;  %s1875_s0 = inlined_call_operand.vmem [shape: bf16[32,80], index: 0, kind: input, shape index: {}]   ;;  %s1876_s1 = inlined_call_operand.hbm [shape: bf16[80,128], index: 1, kind: input, shape index: {}]   ;;  %s1877_s2 = inlined_call_operand.hbm [shape: bf16[5,16,128], index: 2, kind: input, shape index: {}]   ;;  %s1878_s3 = inlined_call_operand.vmem [shape: bf16[48,16], index: 3, kind: input, shape index: {}]   ;;  %s1879_s4 = inlined_call_operand.vmem [shape: f32[1,16], index: 4, kind: input, shape index: {}]   ;;  %s1880_s5 = inlined_call_operand.vmem [shape: f32[1,128], index: 5, kind: input, shape index: {}]   ;;  %s1881_s6 = inlined_call_operand.vmem [shape: f32[1,128], index: 6, kind: input, shape index: {}]   ;;  %s1882_s7 = inlined_call_operand.vmem [shape: f32[1,128], index: 7, kind: input, shape index: {}]   ;;  %s1883_s8 = inlined_call_operand.hbm [shape: f32[32,128], index: 8, kind: output, shape index: {}]  }
   0x1   :  { %14 = vsyncpa [#allocation6], 0 }
   0x2   :  { %15 = vsyncpa [#allocation4], 0 }
   0x3   :  { %17 = vsyncpa [#allocation4 + $0x1], 0  ;;  %s1578_s27 = smov 0   ;;  %s1580_s28 = smov 0  }
   0x4   :  { %s1582_s29 = smov 0   ;;  %s1584_s30 = smov 0  }
   0x5 LB: > { %1888 = sst [smem:[#allocation11_spill]] %s1514_s29  ;;  %s1599_s9 = sadd.s32 4294967295, %s1518_s30   ;;  %s1518_s30 = sphi %s1584_s30, %s1905_s30   ;;  %s1514_s29 = sphi %s1582_s29, %s1902_s29   ;;  %s1510_s28 = sphi %s1580_s28, %s1904_s28   ;;  %s1506_s27 = sphi %s1578_s27, %s1903_s27  }
   0x6   : > { %s1132_s10 = sadd.s32 4294967294, %s1518_s30   ;;  %s1603_s11 = sadd.s32 1, %s1518_s30  }
   0x7   : > { %s203_s12 = sadd.s32 1, %s1514_s29  ;;  %s200_s13 = ssub.s32 %s1518_s30, %s1603_s11 }
   0x8   : > { %p213_p0 = scmp.ne.s32.totalorder %s1514_s29, %s1510_s28  ;;  %p201_p1 = scmp.eq.s32.totalorder %s200_s13, 0 }
   0x9   : > { %p214_p2 = scmp.eq.s32.totalorder %s1599_s9, 1  ;;  %p219_p3 = scmp.ne.s32.totalorder %s1510_s28, %s1506_s27 }
   0xa   : > { %p220_p4 = scmp.eq.s32.totalorder %s1132_s10, 1  ;;  %p1133_p7 = scmp.ge.s32.totalorder %s1518_s30, 1 }
   0xb   : > { %s1614_s14 = scalar_select %p201_p1, %s1514_s29, %s203_s12  }
   0xc   : > { %p1616_p5 = por %p214_p2, %p213_p0  ;;  %p1620_p6 = por %p220_p4, %p219_p3 }
   0xd   : > { %1889 = sst [smem:[#allocation12_spill]] %s1614_s14  ;;  %p227_p8 = scmp.lt.s32.totalorder %s1518_s30, 3 }
   0xe   : > { %s1890_s15 = scalar_select %p1616_p5, 1, 0 }
   0xf   : > { %s1891_s16 = scalar_select %p1620_p6, 1, 0 }
  0x10   : > { %p1884_p9 = scmp.eq.s32.totalorder %s1599_s9, 0  ;;  %p1627_p10 = pnand %p1133_p7, %p227_p8 }
  0x11   : > { %s1520_s18 = smov [#allocation2]   ;;  %s1521_s21 = smov [#allocation5]  }
  0x12   : > { %s1892_s17 = scalar_select %p1627_p10, 1, 0 }
  0x13   : > { %s239_s19 = sshll.u32 %s1520_s18, 4  ;;  %p1318_p11 = pneg %p1627_p10  ;;  %s240_s19 = int_to_ptr.vmem [resolvable:$true] %s239_s19 }
  0x14   : > { %s252_s22 = sshll.u32 %s1521_s21, 4  ;;  %s1392_s25 = scalar_lea.hbm %s1876_s1, 640  ;;  %s1639_s22 = int_to_ptr.vmem [resolvable:$true] %s252_s22 }
  0x15   : > { %p1635_p12 = pnand %p1884_p9, %p1318_p11  ;;  %p1393_p13 = scmp.ne.s32.totalorder %s1876_s1, %s1392_s25 }
  0x16   : > { %p1399_p3 = scmp.lt.u32.totalorder %s1392_s25, %s1876_s1 }
  0x17   : > { %p1394_p0 = pneg %p1635_p12 }
  0x19   : > { %p1395_p1 = pnand %p1394_p0, %p1393_p13 }
  0x1b   : > { %p1396_p2 = pneg %p1395_p1 }
  0x1d   : > { %p1401_p4 = pnand %p1399_p3, %p1396_p2 }
  0x1f   : > { %1404 = shalt.err (!%p1401_p4)
}
  0x20   : > { %s1405_s18 = scalar_lea.vmem %s240_s19, 640  ;;  %p1413_p9 = scmp.lt.s32.totalorder %s240_s19, %s240_s19 }
  0x21   : > { %p1406_p7 = scmp.ne.s32.totalorder %s240_s19, %s1405_s18  ;;  %p1414_p6 = scmp.lt.s32.totalorder %s1405_s18, %s1405_s18 }
  0x23   : > { %p1408_p8 = pnand %p1406_p7, %p1394_p0  ;;  %p1415_p5 = por %p1414_p6, %p1413_p9 }
  0x25   : > { %p1409_p11 = pneg %p1408_p8 }
  0x27   : > { %p1416_p10 = pnand %p1415_p5, %p1409_p11 }
  0x29   : > { %1419 = shalt.err (!%p1416_p10)
}
  0x2a   : > { %s1522_s21 = smov 64   ;;  %s1523_s23 = smov 4  }
  0x2b   : > { %1321 = dma.hbm_to_vmem [thread:$0]  (!%p1635_p12), %s1876_s1, 640, %s240_s19, [#allocation3], %s1522_s21, %s1522_s21, %s1523_s23  }
  0x2c   : > { %s1420_s12 = scalar_lea.hbm %s1877_s2, 640 }
  0x2d   : > { %p1421_p13 = scmp.ne.s32.totalorder %s1877_s2, %s1420_s12  ;;  %p1427_p9 = scmp.lt.u32.totalorder %s1420_s12, %s1877_s2 }
  0x2f   : > { %p1423_p5 = pnand %p1421_p13, %p1394_p0 }
  0x31   : > { %p1424_p6 = pneg %p1423_p5 }
  0x33   : > { %p1429_p10 = pnand %p1427_p9, %p1424_p6 }
  0x35   : > { %1432 = shalt.err (!%p1429_p10)
}
  0x36   : > { %s1433_s19 = scalar_lea.vmem %s1639_s22, 640  ;;  %p1441_p4 = scmp.lt.s32.totalorder %s1639_s22, %s1639_s22 }
  0x37   : > { %p1434_p1 = scmp.ne.s32.totalorder %s1639_s22, %s1433_s19  ;;  %p1442_p7 = scmp.lt.s32.totalorder %s1433_s19, %s1433_s19 }
  0x39   : > { %p1436_p2 = pnand %p1434_p1, %p1394_p0  ;;  %p1443_p8 = por %p1442_p7, %p1441_p4 }
  0x3b   : > { %p1437_p3 = pneg %p1436_p2 }
  0x3d   : > { %p1444_p11 = pnand %p1443_p8, %p1437_p3 }
  0x3f   : > { %1447 = shalt.err (!%p1444_p11)
}
  0x40   : > { %1324 = dma.hbm_to_vmem [thread:$0]  (!%p1635_p12), %s1877_s2, 640, %s1639_s22, [#allocation6], %s1522_s21, %s1522_s21, %s1523_s23  }
  0x41   : > { %p1894_p13 = scmp.ne.s32.totalorder %s1892_s17, 0 }
  0x42   : > { %p1895_p5 = scmp.eq.s32.totalorder (!%p1894_p13), %s1599_s9, 0 }
  0x43   : > { %292 = sbr.rel (%p1894_p13) target bundleno = 1055 (0x41f), region = 52 }
  0x4a   : > { %1493 = dma.done.wait (%p1895_p5), [#allocation3], 640   ;;  %p1896_p0 = pmov %p1895_p5 }
  0x4c   : > { %1495 = vsyncadd (%p1896_p0), [#allocation3], 4294966656  ;;  %p1897_p6 = pmov %p1896_p0 }
  0x4d   : > { %p1898_p9 = pmov %p1896_p0 }
  0x4e   : > { %1497 = dma.done.wait (%p1897_p6), [#allocation6], 640  }
  0x4f   : > { %1499 = vsyncadd (%p1898_p9), [#allocation6], 4294966656  ;;  %s1141_s20 = sshll.u32 %s1599_s9, 1  ;;  %v1524_v0 = vmov 0.0   ;;  %vm1525_vm0 = vmmov 0   ;;  %v1711_v1 = vld [vmem:[%s1878_s3] sm:$0xff]  }
  0x50   : > { %1214 = vmatprep.subr.bf16.mxu0 %v1524_v0  ;;  %p331_p12 = scmp.lt.s32.totalorder %s1141_s20, 3  ;;  %1220 = vmatprep.mubr.msk.bf16.mxu0 %vm1525_vm0, %v1524_v0  ;;  %v1719_v3 = vld [vmem:[%s1878_s3 + $0x8] sm:$0xff]   ;;  %s1526_s12 = smov 120   ;;  %vm386_vm1 = vcmask 392192   ;;  %v1726_v4 = vld [vmem:[%s1878_s3 + $0x10] sm:$0xff]   ;;  %vm446_vm4 = vcmask 130048  }
  0x51   : > { %1224 = vmatprep.subr.bf16.mxu1 %v1524_v0  ;;  %1226 = vmatprep.mubr.msk.bf16.mxu1 %vm1525_vm0, %v1524_v0  ;;  %s1527_s19 = smov 104   ;;  %s1528_s29 = smov 112   ;;  %v1382_v5 = vld [vmem:[#allocation5] sm:$0xff]   ;;  %v1388_v7 = vld [vmem:[#allocation5 + $0x8] sm:$0xff]   ;;  %v1753_v8 = vld [vmem:[%s1879_s4] ss:$0 sm:$0xff] }
  0x52   : > { %s1907_s20 = smov (!%p331_p12, %s1141_s20), 3  ;;  %1215 = vmatpush3.bf16.msra.mxu0 %v1711_v1  ;;  %1225 = vmatpush3.bf16.msra.mxu1 %v1382_v5  ;;  %s1529_s14 = smov 96   ;;  %v1383_v19 = vld [vmem:[#allocation2] sm:$0xff]   ;;  %v1384_v21 = vld [vmem:[#allocation2 + $0x8] sm:$0xff]   ;;  %v1385_v22 = vld [vmem:[#allocation2 + $0x10] sm:$0xff]   ;;  %vm521_vm5 = vcmask 654336  }
  0x53   : > { %s1142_s17 = sshll.u32 %s1907_s20, 2  ;;  %1216 = vmatprep.subr.bf16.mxu0 %v1524_v0  ;;  %1230 = vmatprep.subr.bf16.mxu1 %v1524_v0  ;;  %v1386_v23 = vld [vmem:[#allocation2 + $0x18] sm:$0xff]   ;;  %v1387_v24 = vld [vmem:[#allocation2 + $0x20] sm:$0xff]   ;;  %s1177_s13 = sshll.u32 %s1599_s9, 8 }
  0x54   : > { %s334_s23 = scalar_lea.vmem %s1875_s0, %s1142_s17  ;;  %v1389_v38 = vld [vmem:[#allocation5 + $0x10] sm:$0xff]   ;;  %v1390_v59 = vld [vmem:[#allocation5 + $0x18] sm:$0xff]   ;;  %s1828_s20 = scalar_lea.hbm %s1883_s8, %s1177_s13 }
  0x55   : > { %v1713_v2 = vld [vmem:[%s334_s23] sm:$0xff]   ;;  %s327_s23 = sand.u32 1, %s1510_s28   ;;  %p1899_p1 = scmp.ne.s32.totalorder %s1890_s15, 0 }
  0x56   : > { %565 = vrot.lane.b32.xlu0 %v1713_v2, %s1526_s12  ;;  %781 = vrot.lane.b32.xlu1 %v1713_v2, %s1527_s19  ;;  %s1140_s24 = sshll.u32 %s327_s23, 4  ;;  %s1834_s9 = scalar_lea.sflag [#allocation4], %s327_s23 }
  0x57   : > { %1217 = vmatpush3.bf16.msra.mxu0 %v1719_v3  ;;  %s329_s18 = scalar_lea.vmem [#allocation7], %s1140_s24  ;;  %s1530_s22 = smov [#allocation7]  }
  0x58   : > { %1218 = vmatprep.subr.bf16.mxu0 %v1524_v0  ;;  %s1048_s19 = sshll.u32 %s329_s18, 4  ;;  %s1452_s21 = sshll.u32 %s1530_s22, 4  ;;  %s1830_s19 = int_to_ptr.vmem [resolvable:$true] %s1048_s19  ;;  %s1453_s21 = int_to_ptr.vmem [resolvable:$false] %s1452_s21 }
  0x59   : > { %s1448_s17 = scalar_lea.vmem %s1830_s19, 256  ;;  %s1454_s24 = scalar_lea.vmem %s1453_s21, 512 }
  0x5a   : > { %673 = vrot.lane.b32.xlu0 %v1713_v2, %s1528_s29  ;;  %889 = vrot.lane.b32.xlu1 %v1713_v2, %s1529_s14  ;;  %p1449_p10 = scmp.ne.s32.totalorder %s1830_s19, %s1448_s17  ;;  %p1455_p4 = scmp.lt.s32.totalorder %s1830_s19, %s1453_s21 }
  0x5b   : > { %1219 = vmatpush3.bf16.msra.mxu0 %v1726_v4  ;;  %p1456_p7 = scmp.lt.s32.totalorder %s1454_s24, %s1448_s17 }
  0x5c   : > { %1244 = vmatprep.subr.bf16.mxu0 %v1524_v0  ;;  %p1450_p2 = pnand %p1449_p10, %p1899_p1 }
  0x5d   : > { %p1457_p8 = por %p1456_p7, %p1455_p4 }
  0x5e   : > { %1221 = vmatmul.mubr.msk.bf16.vlgmr.msra.gmra.mrb[0].mxu0 %vm386_vm1, %v1713_v2  ;;  %p1451_p3 = pneg %p1450_p2 }
  0x5f   : > { %1245 = vmatpush3.bf16.msra.mxu0 %v1711_v1  ;;  %1250 = vmatprep.mubr.msk.bf16.mxu0 %vm1525_vm0, %v1524_v0 }
  0x60   : > { %1246 = vmatprep.subr.bf16.mxu0 %v1524_v0  ;;  %p1458_p11 = pnand %p1457_p8, %p1451_p3 }
  0x63   : > { %1247 = vmatpush3.bf16.msra.mxu0 %v1719_v3 }
  0x64   : > { %1248 = vmatprep.subr.bf16.mxu0 %v1524_v0 }
  0x67   : > { %1249 = vmatpush3.bf16.msra.mxu0 %v1726_v4 }
  0x68   : > { %1254 = vmatprep.subr.bf16.mxu0 %v1524_v0 }
  0xc8   : > { %v566_v6 = vpop.permute.xlu0 %565  ;;  %v782_v26 = vpop.permute.xlu1 %781 }
  0xc9   : > { %1251 = vmatmul.mubr.msk.bf16.vlgmr.msra.gmra.mrb[4].mxu0 %vm386_vm1, %v566_v6 }
  0xca   : > { %1256 = vmatprep.mubr.msk.bf16.mxu0 %vm1525_vm0, %v1524_v0  ;;  %1255 = vmatpush3.bf16.msra.mxu0 %v1388_v7 }
  0xcb   : > { %1270 = vmatprep.subr.bf16.mxu0 %v1524_v0 }
  0xcc   : > { %v674_v25 = vpop.permute.xlu0 %673 }
 0x131   : > { %v424_v9 = vpop.f32.mrb[0].mxu0 }
 0x132   : > { %v425_v10 = vadd.f32 %v1753_v8, %v424_v9  ;;  %v1222_v11 = vpop.f32.mrb[1].mxu0 }
 0x133   : > { %v427_v12 = vpop.f32.mrb[2].mxu0 }
 0x134   : > { %v433_v13 = vmul.f32 0.01, %v425_v10  ;;  %v428_v14 = vadd.f32 %v1753_v8, %v427_v12  ;;  %v1223_v15 = vpop.f32.mrb[3].mxu0  ;;  %vm431_vm2 = vcmp.gt.f32.partialorder %v425_v10, 0.0 }
 0x136   : > { %vm432_vm3 = vcmp.gt.f32.partialorder %v428_v14, 0.0  ;;  %v434_v16 = vmul.f32 0.01, %v428_v14  ;;  %v435_v17 = vsel %vm431_vm2, %v425_v10, %v433_v13  ;;  %v890_v13 = vpop.permute.xlu1 %889 }
 0x138   : > { %v436_v18 = vsel %vm432_vm3, %v428_v14, %v434_v16 }
 0x139   : > { %v437_v20 = vpack.c.bf16 %v436_v18, %v435_v17 }
 0x13b   : > { %1227 = vmatmul.mubr.msk.bf16.vlgmr.msra.gmra.mrb[0].mxu1 %vm446_vm4, %v437_v20 }
 0x13c   : > { %1231 = vmatpush3.bf16.msra.mxu1 %v1383_v19  ;;  %1240 = vmatprep.mubr.msk.bf16.mxu1 %vm1525_vm0, %v1524_v0  ;;  %v1391_v19 = vld [vmem:[#allocation5 + $0x20] sm:$0xff]  }
 0x13d   : > { %1232 = vmatprep.subr.bf16.mxu1 %v1524_v0 }
 0x140   : > { %1233 = vmatpush3.bf16.msra.mxu1 %v1384_v21 }
 0x141   : > { %1234 = vmatprep.subr.bf16.mxu1 %v1524_v0 }
 0x144   : > { %1235 = vmatpush3.bf16.msra.mxu1 %v1385_v22 }
 0x145   : > { %1236 = vmatprep.subr.bf16.mxu1 %v1524_v0 }
 0x148   : > { %1237 = vmatpush3.bf16.msra.mxu1 %v1386_v23 }
 0x149   : > { %1238 = vmatprep.subr.bf16.mxu1 %v1524_v0 }
 0x14c   : > { %1239 = vmatpush3.bf16.msra.mxu1 %v1387_v24 }
 0x14d   : > { %1260 = vmatprep.subr.bf16.mxu1 %v1524_v0 }
 0x14f   : > { %1241 = vmatmul.mubr.msk.bf16.vlgmr.msra.gmra.mrb[4].mxu1 %vm521_vm5, %v1713_v2 }
 0x150   : > { %1261 = vmatpush3.bf16.msra.mxu1 %v1711_v1  ;;  %1266 = vmatprep.mubr.msk.bf16.mxu1 %vm1525_vm0, %v1524_v0 }
 0x151   : > { %1262 = vmatprep.subr.bf16.mxu1 %v1524_v0 }
 0x154   : > { %1263 = vmatpush3.bf16.msra.mxu1 %v1719_v3 }
 0x155   : > { %1264 = vmatprep.subr.bf16.mxu1 %v1524_v0 }
 0x158   : > { %1265 = vmatpush3.bf16.msra.mxu1 %v1726_v4 }
 0x159   : > { %1276 = vmatprep.subr.bf16.mxu1 %v1524_v0 }
 0x15b   : > { %1267 = vmatmul.mubr.msk.bf16.vlgmr.msra.gmra.mrb[8].mxu1 %vm386_vm1, %v674_v25 }
 0x15c   : > { %1277 = vmatpush3.bf16.msra.mxu1 %v1711_v1  ;;  %1282 = vmatprep.mubr.msk.bf16.mxu1 %vm1525_vm0, %v1524_v0 }
 0x15d   : > { %1278 = vmatprep.subr.bf16.mxu1 %v1524_v0 }
 0x160   : > { %1279 = vmatpush3.bf16.msra.mxu1 %v1719_v3 }
 0x161   : > { %1280 = vmatprep.subr.bf16.mxu1 %v1524_v0 }
 0x164   : > { %1281 = vmatpush3.bf16.msra.mxu1 %v1726_v4 }
 0x165   : > { %1302 = vmatprep.subr.bf16.mxu1 %v1524_v0 }
 0x167   : > { %1283 = vmatmul.mubr.msk.bf16.vlgmr.msra.gmra.mrb[12].mxu1 %vm386_vm1, %v782_v26 }
 0x168   : > { %1304 = vmatprep.mubr.msk.bf16.mxu1 %vm1525_vm0, %v1524_v0  ;;  %1303 = vmatpush3.bf16.msra.mxu1 %v1391_v19 }
 0x19c   : > { %v604_v27 = vpop.f32.mrb[4].mxu0 }
 0x19d   : > { %v605_v28 = vadd.f32 %v1753_v8, %v604_v27  ;;  %v1252_v29 = vpop.f32.mrb[5].mxu0 }
 0x19e   : > { %v607_v30 = vpop.f32.mrb[6].mxu0 }
 0x19f   : > { %vm611_vm6 = vcmp.gt.f32.partialorder %v605_v28, 0.0  ;;  %v613_v31 = vmul.f32 0.01, %v605_v28  ;;  %v608_v32 = vadd.f32 %v1753_v8, %v607_v30  ;;  %v1253_v33 = vpop.f32.mrb[7].mxu0 }
 0x1a1   : > { %v615_v34 = vsel %vm611_vm6, %v605_v28, %v613_v31  ;;  %vm612_vm7 = vcmp.gt.f32.partialorder %v608_v32, 0.0  ;;  %v614_v35 = vmul.f32 0.01, %v608_v32 }
 0x1a3   : > { %v616_v36 = vsel %vm612_vm7, %v608_v32, %v614_v35 }
 0x1a4   : > { %v617_v37 = vpack.c.bf16 %v616_v36, %v615_v34 }
 0x1a6   : > { %1257 = vmatmul.mubr.msk.bf16.vlgmr.msra.gmra.mrb[8].mxu0 %vm446_vm4, %v617_v37 }
 0x1a7   : > { %1272 = vmatprep.mubr.msk.bf16.mxu0 %vm1525_vm0, %v1524_v0  ;;  %1271 = vmatpush3.bf16.msra.mxu0 %v1389_v38 }
 0x1a8   : > { %1286 = vmatprep.subr.bf16.mxu0 %v1524_v0 }
 0x20e   : > { %v484_v39 = vpop.f32.mrb[0].mxu1 }
 0x20f   : > { %v1228_v40 = vpop.f32.mrb[1].mxu1 }
 0x210   : > { %v487_v41 = vpop.f32.mrb[2].mxu1 }
 0x211   : > { %v1229_v42 = vpop.f32.mrb[3].mxu1 }
 0x222   : > { %v558_v43 = vpop.f32.mrb[4].mxu1 }
 0x223   : > { %v559_v44 = vadd.f32 %v558_v43, %v484_v39  ;;  %v1242_v45 = vpop.f32.mrb[5].mxu1 }
 0x224   : > { %v561_v46 = vpop.f32.mrb[6].mxu1 }
 0x225   : > { %v562_v47 = vadd.f32 %v561_v46, %v487_v41  ;;  %v1243_v48 = vpop.f32.mrb[7].mxu1  ;;  %v1169_v41 = vld [vmem:[%s1880_s5] ss:$0 sm:$0xff] }
 0x22e   : > { %v712_v49 = vpop.f32.mrb[8].mxu1 }
 0x22f   : > { %v713_v50 = vadd.f32 %v1753_v8, %v712_v49  ;;  %v1268_v51 = vpop.f32.mrb[9].mxu1 }
 0x230   : > { %v715_v52 = vpop.f32.mrb[10].mxu1 }
 0x231   : > { %v721_v53 = vmul.f32 0.01, %v713_v50  ;;  %v716_v54 = vadd.f32 %v1753_v8, %v715_v52  ;;  %v1269_v55 = vpop.f32.mrb[11].mxu1  ;;  %vm719_vm8 = vcmp.gt.f32.partialorder %v713_v50, 0.0 }
 0x233   : > { %vm720_vm9 = vcmp.gt.f32.partialorder %v716_v54, 0.0  ;;  %v722_v56 = vmul.f32 0.01, %v716_v54  ;;  %v723_v57 = vsel %vm719_vm8, %v713_v50, %v721_v53  ;;  %v1171_v50 = vld [vmem:[%s1882_s7] ss:$0 sm:$0xff] }
 0x235   : > { %v724_v58 = vsel %vm720_vm9, %v716_v54, %v722_v56 }
 0x236   : > { %v725_v60 = vpack.c.bf16 %v724_v58, %v723_v57 }
 0x238   : > { %1273 = vmatmul.mubr.msk.bf16.vlgmr.msra.gmra.mrb[12].mxu0 %vm446_vm4, %v725_v60 }
 0x239   : > { %1287 = vmatpush3.bf16.msra.mxu0 %v1390_v59  ;;  %1288 = vmatprep.mubr.msk.bf16.mxu0 %vm1525_vm0, %v1524_v0 }
 0x23a   : > { %v820_v61 = vpop.f32.mrb[12].mxu1  ;;  %1292 = vmatprep.subr.bf16.mxu0 %v1524_v0 }
 0x23b   : > { %v821_v62 = vadd.f32 %v1753_v8, %v820_v61  ;;  %v1284_v63 = vpop.f32.mrb[13].mxu1 }
 0x23c   : > { %v823_v2 = vpop.f32.mrb[14].mxu1 }
 0x23d   : > { %v829_v5 = vmul.f32 0.01, %v821_v62  ;;  %v824_v6 = vadd.f32 %v1753_v8, %v823_v2  ;;  %v1285_v7 = vpop.f32.mrb[15].mxu1  ;;  %vm827_vm10 = vcmp.gt.f32.partialorder %v821_v62, 0.0 }
 0x23f   : > { %vm828_vm11 = vcmp.gt.f32.partialorder %v824_v6, 0.0  ;;  %v830_v9 = vmul.f32 0.01, %v824_v6  ;;  %v831_v10 = vsel %vm827_vm10, %v821_v62, %v829_v5 }
 0x241   : > { %v832_v11 = vsel %vm828_vm11, %v824_v6, %v830_v9 }
 0x242   : > { %v833_v12 = vpack.c.bf16 %v832_v11, %v831_v10 }
 0x244   : > { %1289 = vmatmul.mubr.msk.bf16.vlgmr.msra.gmra.mrb[16].mxu0 %vm446_vm4, %v833_v12 }
 0x245   : > { %1293 = vmatpush3.bf16.msra.mxu0 %v1711_v1  ;;  %1298 = vmatprep.mubr.msk.bf16.mxu0 %vm1525_vm0, %v1524_v0 }
 0x246   : > { %1294 = vmatprep.subr.bf16.mxu0 %v1524_v0 }
 0x249   : > { %1295 = vmatpush3.bf16.msra.mxu0 %v1719_v3 }
 0x24a   : > { %1296 = vmatprep.subr.bf16.mxu0 %v1524_v0 }
 0x24d   : > { %1297 = vmatpush3.bf16.msra.mxu0 %v1726_v4 }
 0x250   : > { %1299 = vmatmul.mubr.msk.bf16.vlgmr.msra.gmra.mrb[20].mxu0 %vm386_vm1, %v890_v13 }
 0x279   : > { %v664_v14 = vpop.f32.mrb[8].mxu0 }
 0x27a   : > { %v671_v15 = vadd.f32 %v664_v14, %v559_v44  ;;  %v1258_v16 = vpop.f32.mrb[9].mxu0 }
 0x27b   : > { %v667_v17 = vpop.f32.mrb[10].mxu0 }
 0x27c   : > { %v672_v18 = vadd.f32 %v667_v17, %v562_v47  ;;  %v1259_v1 = vpop.f32.mrb[11].mxu0  ;;  %v1170_v47 = vld [vmem:[%s1881_s6] ss:$0 sm:$0xff] }
 0x30b   : > { %v772_v20 = vpop.f32.mrb[12].mxu0 }
 0x30c   : > { %v779_v21 = vadd.f32 %v772_v20, %v671_v15  ;;  %v1274_v22 = vpop.f32.mrb[13].mxu0 }
 0x30d   : > { %v775_v23 = vpop.f32.mrb[14].mxu0 }
 0x30e   : > { %v780_v3 = vadd.f32 %v775_v23, %v672_v18  ;;  %v1275_v24 = vpop.f32.mrb[15].mxu0 }
 0x317   : > { %v880_v0 = vpop.f32.mrb[16].mxu0 }
 0x318   : > { %v887_v25 = vadd.f32 %v880_v0, %v779_v21  ;;  %v1290_v4 = vpop.f32.mrb[17].mxu0 }
 0x319   : > { %v883_v26 = vpop.f32.mrb[18].mxu0 }
 0x31a   : > { %v888_v27 = vadd.f32 %v883_v26, %v780_v3  ;;  %v1291_v28 = vpop.f32.mrb[19].mxu0 }
 0x323   : > { %v928_v29 = vpop.f32.mrb[20].mxu0 }
 0x324   : > { %v929_v30 = vadd.f32 %v1753_v8, %v928_v29  ;;  %v1300_v31 = vpop.f32.mrb[21].mxu0 }
 0x325   : > { %v931_v32 = vpop.f32.mrb[22].mxu0 }
 0x326   : > { %v937_v33 = vmul.f32 0.01, %v929_v30  ;;  %v932_v34 = vadd.f32 %v1753_v8, %v931_v32  ;;  %v1301_v35 = vpop.f32.mrb[23].mxu0  ;;  %vm935_vm12 = vcmp.gt.f32.partialorder %v929_v30, 0.0 }
 0x328   : > { %vm936_vm13 = vcmp.gt.f32.partialorder %v932_v34, 0.0  ;;  %v938_v36 = vmul.f32 0.01, %v932_v34  ;;  %v939_v37 = vsel %vm935_vm12, %v929_v30, %v937_v33 }
 0x32a   : > { %v940_v38 = vsel %vm936_vm13, %v932_v34, %v938_v36 }
 0x32b   : > { %v941_v39 = vpack.c.bf16 %v940_v38, %v939_v37 }
 0x32d   : > { %1305 = vmatmul.mubr.msk.bf16.vlgmr.msra.gmra.mrb[16].mxu1 %vm446_vm4, %v941_v39 }
 0x400   : > { %v988_v40 = vpop.f32.mrb[16].mxu1 }
 0x401   : > { %v995_v42 = vadd.f32 %v988_v40, %v887_v25  ;;  %v1306_v43 = vpop.f32.mrb[17].mxu1 }
 0x402   : > { %v991_v8 = vpop.f32.mrb[18].mxu1 }
 0x403   : > { %v1004_v44 = vadd.f32 %v1169_v41, %v995_v42  ;;  %v996_v45 = vadd.f32 %v991_v8, %v888_v27  ;;  %v1307_v46 = vpop.f32.mrb[19].mxu1 }
 0x405   : > { %v1006_v48 = vmax.f32 %v1004_v44, 0.0  ;;  %v1005_v49 = vadd.f32 %v1169_v41, %v996_v45 }
 0x407   : > { %v1015_v51 = vmul.f32 %v1170_v47, %v1006_v48  ;;  %v1007_v52 = vmax.f32 %v1005_v49, 0.0 }
 0x409   : > { %v1024_v53 = vadd.f32 %v1171_v50, %v1015_v51  ;;  %v1016_v54 = vmul.f32 %v1170_v47, %v1007_v52 }
 0x40b   : > { %vm1026_vm14 = vcmp.gt.f32.partialorder %v1024_v53, 0.0  ;;  %v1028_v55 = vmul.f32 0.01, %v1024_v53  ;;  %v1025_v56 = vadd.f32 %v1171_v50, %v1016_v54 }
 0x40d   : > { %v1030_v57 = vsel %vm1026_vm14, %v1024_v53, %v1028_v55  ;;  %vm1027_vm15 = vcmp.gt.f32.partialorder %v1025_v56, 0.0  ;;  %v1029_v58 = vmul.f32 0.01, %v1025_v56 }
 0x40e   : > { %1032 = vst [vmem:[%s329_s18] sm:$0xff] %v1030_v57 }
 0x40f   : > { %v1031_v59 = vsel %vm1027_vm15, %v1025_v56, %v1029_v58 }
 0x410   : > { %1033 = vst [vmem:[%s329_s18 + $0x8] sm:$0xff] %v1031_v59 }
 0x411   : > { %1461 = shalt.err (!%p1458_p11)
}
 0x412   : > { %s1462_s23 = scalar_lea.hbm %s1828_s20, 256  ;;  %s1466_s10 = scalar_lea.hbm %s1883_s8, 512 }
 0x413   : > { %p1463_p13 = scmp.ne.s32.totalorder %s1828_s20, %s1462_s23  ;;  %p1467_p6 = scmp.lt.u32.totalorder %s1828_s20, %s1883_s8 }
 0x414   : > { %p1468_p9 = scmp.lt.u32.totalorder %s1466_s10, %s1462_s23  ;;  %p1470_p10 = scmp.lt.u32.totalorder %s1462_s23, %s1828_s20 }
 0x415   : > { %p1464_p5 = pnand %p1463_p13, %p1899_p1 }
 0x416   : > { %p1469_p12 = por %p1468_p9, %p1467_p6 }
 0x417   : > { %p1465_p0 = pneg %p1464_p5 }
 0x418   : > { %p1471_p2 = por %p1470_p10, %p1469_p12 }
 0x41a   : > { %p1472_p3 = pnand %p1471_p2, %p1465_p0 }
 0x41c   : > { %1475 = shalt.err (!%p1472_p3)
}
 0x41d   : > { %s1531_s18 = smov 128   ;;  %s1532_s29 = smov 8  }
 0x41e   : > { %1316 = dma.vmem_to_hbm [thread:$0]  (%p1899_p1), %s1830_s19, 256, %s1828_s20, %s1834_s9, %s1531_s18, %s1531_s18, %s1532_s29  }
 0x41f PF: > { %p1333_p4 = scmp.ge.s32.totalorder %s1518_s30, 2  ;;  %s1063_s14 = sand.u32 1, %s1506_s27  }
 0x420   : > { %p1900_p7 = scmp.ne.s32.totalorder %s1891_s16, 0  ;;  %s1064_s17 = scalar_lea.sflag [#allocation4], %s1063_s14 }
 0x422   : > { %p1326_p8 = pnand %p1333_p4, %p1900_p7 }
 0x424   : > { %1501 = dma.done.wait (!%p1326_p8), %s1064_s17, 256  }
 0x425   : > { %1503 = vsyncadd (!%p1326_p8), %s1064_s17, 4294967040  ;;  %s1901_s22 = sld [smem:[#allocation11_spill]]  ;;  %s1902_s29 = sld [smem:[#allocation12_spill]] }
 0x426   : > { %p20_p11 = scmp.ge.s32.totalorder %s1603_s11, 4   ;;  %s1903_s27 = smov %s1510_s28 }
 0x427   : > { %s1905_s30 = smov %s1603_s11 }
 0x428   :  { %22 = sbr.rel (!%p20_p11) target bundleno = 5 (0x5), region = 100 }
 0x42b   : > { %s1904_s28 = smov %s1901_s22 }
 0x42f   :  { %1069 = vsyncpa [#allocation3], 1 }
 0x430   :  { %1071 = vsyncpa [#allocation3 + $0x1], 1 }
 0x431   :  { %1072 = vsyncpa [#allocation6], 1 }
 0x432   :  { %1073 = vsyncpa [#allocation4], 1 }
 0x433   :  { %1075 = vsyncpa [#allocation4 + $0x1], 1 }

</bundles_post_ra>
